<compile_context>
chip_gen: v6e
topology: v6e:2x2x1
jax: 0.10.0
libtpu: 0.0.40
codegen_flags: <defaults>
</compile_context>

<pallas_src>
import jax
import jax.numpy as jnp
from jax import lax
from jax.experimental import pallas as pl
from jax.experimental.pallas import tpu as pltpu

# ---------------- config (small, consistent with the module) ----------------
GLOVE_VOCAB, GLOVE_DIM = 50, 12
TURIAN_VOCAB, TURIAN_DIM = 40, 8
CHAR_VOCAB = 20                 # len(char vocab); table has CHAR_VOCAB + 2 rows
CHAR_DIM = 8                    # CharCNN char_dim (Conv1d length axis)
PAD_SIZE = 15                   # CharCNN pad_size  (Conv1d in_channels)
CHAR_FILTERS = 6                # Conv1d out_channels
HIDDEN_DIM = 16                 # LSTM hidden size
N_LAYERS = 2                    # LSTM layers (bidirectional)
EMB_DIM = GLOVE_DIM + TURIAN_DIM + CHAR_FILTERS   # LSTM input size = 26
KERNEL_SIZES = (3, 4, 5)


# ============================ Pallas kernels ================================

def charcnn_kernel(x_ref, w_ref, b_ref, out_ref):
    """Fused Conv1d(k=3,4,5) + ReLU + concat + max-pool as ONE matmul.

    x_ref : (N, CHAR_DIM*PAD_SIZE)   flattened (L, C) per token
    w_ref : (CHAR_DIM*PAD_SIZE, P_total*F)  block-Toeplitz conv matrix
    b_ref : (1, P_total*F)           per-column bias (replicated per position)
    out   : (N, F)                   max over all P_total conv output positions
    """
    F_ = out_ref.shape[1]
    y = jnp.dot(x_ref[...], w_ref[...], preferred_element_type=jnp.float32)
    y = jnp.maximum(y + b_ref[...], 0.0)           # (N, P_total*F), bias hoisted
    n_pos = y.shape[1] // F_
    pooled = y[:, 0:F_]
    for p in range(1, n_pos):                      # short static VPU max-fold
        pooled = jnp.maximum(pooled, y[:, p * F_:(p + 1) * F_])
    out_ref[...] = pooled


def bilstm_layer_kernel(lens_ref, x_ref, wih_ref, whh_ref, b_ref,
                        outf_ref, outb_ref, gx_ref):
    """One bidirectional LSTM layer over a whole (padded) batch of sentences.

    Layout: rows are time-major-flat, row = t * B + b.
      lens_ref : (B, 1) int32     valid length per sentence
      x_ref    : (T*B, Din)
      wih_ref  : (Din, 8H)        [W_ih_fwd^T | W_ih_bwd^T]
      whh_ref  : (2H, 8H)         block-diag(W_hh_fwd^T, W_hh_bwd^T)
      b_ref    : (1, 8H)          [b_fwd | b_bwd]  (b_ih + b_hh per direction)
      outf_ref : (T*B, H)  forward hidden states
      outb_ref : (T*B, H)  backward hidden states (already time-aligned)
      gx_ref   : (T*B, 8H) VMEM scratch for the hoisted input projection
    Gate order follows PyTorch: i, f, g, o.
    """
    TB = x_ref.shape[0]
    H = outf_ref.shape[1]
    B = lens_ref.shape[0]
    T = TB // B

    # Hoisted input projection for BOTH directions, bias folded in: one matmul.
    gx_ref[...] = (jnp.dot(x_ref[...], wih_ref[...],
                           preferred_element_type=jnp.float32) + b_ref[...])

    whh = whh_ref[...]            # (2H, 8H)
    lens = lens_ref[...]          # (B, 1) int32

    def cell(g, c):               # g: (B, 4H), c: (B, H)
        i = jax.nn.sigmoid(g[:, 0 * H:1 * H])
        f = jax.nn.sigmoid(g[:, 1 * H:2 * H])
        gg = jnp.tanh(g[:, 2 * H:3 * H])
        o = jax.nn.sigmoid(g[:, 3 * H:4 * H])
        c2 = f * c + i * gg
        return o * jnp.tanh(c2), c2

    def step(t, carry):
        h_f, c_f, h_b, c_b = carry
        tb = T - 1 - t                                   # backward time index
        rf = pl.multiple_of(t * B, B)
        rb = pl.multiple_of(tb * B, B)
        gxf = gx_ref[pl.ds(rf, B), :]                    # (B, 8H)
        gxb = gx_ref[pl.ds(rb, B), :]
        # one block-diagonal recurrence matmul serves both directions
        gh = jnp.dot(jnp.concatenate([h_f, h_b], axis=1), whh,
                     preferred_element_type=jnp.float32)  # (B, 8H)
        hf2, cf2 = cell(gxf[:, 0:4 * H] + gh[:, 0:4 * H], c_f)
        hb2, cb2 = cell(gxb[:, 4 * H:8 * H] + gh[:, 4 * H:8 * H], c_b)
        # packed-sequence semantics: zero the carry on padded steps
        vf = t < lens                                    # (B, 1) bool
        vb = tb < lens
        h_f = jnp.where(vf, hf2, 0.0)
        c_f = jnp.where(vf, cf2, 0.0)
        h_b = jnp.where(vb, hb2, 0.0)
        c_b = jnp.where(vb, cb2, 0.0)
        outf_ref[pl.ds(rf, B), :] = h_f
        outb_ref[pl.ds(rb, B), :] = h_b
        return (h_f, c_f, h_b, c_b)

    z = jnp.zeros((B, H), jnp.float32)
    lax.fori_loop(0, T, step, (z, z, z, z), unroll=True)


# ============================== wrappers ====================================

def charcnn_pallas(char_embedded, w_fused, b_fused):
    """char_embedded: (N, PAD_SIZE, CHAR_DIM) == PyTorch Conv1d NCL input."""
    N = char_embedded.shape[0]
    # (N, C, L) -> (N, L, C) -> (N, L*C) : char position l lives in lanes [l*C,(l+1)*C)
    x = jnp.transpose(char_embedded, (0, 2, 1)).reshape(N, CHAR_DIM * PAD_SIZE)
    cols = w_fused.shape[1]
    return pl.pallas_call(
        charcnn_kernel,
        out_shape=jax.ShapeDtypeStruct((N, CHAR_FILTERS), jnp.float32),
        in_specs=[
            pl.BlockSpec((N, CHAR_DIM * PAD_SIZE), lambda: (0, 0)),
            pl.BlockSpec((CHAR_DIM * PAD_SIZE, cols), lambda: (0, 0)),
            pl.BlockSpec((1, cols), lambda: (0, 0)),
        ],
        out_specs=pl.BlockSpec((N, CHAR_FILTERS), lambda: (0, 0)),
    )(x, w_fused, b_fused)


def bilstm_layer_pallas(x_flat, lens, wih, whh, b):
    """x_flat: (T_max*B, Din) time-major-flat.  Returns (T_max*B, 2H)."""
    TB, Din = x_flat.shape
    H = whh.shape[0] // 2
    B = lens.shape[0]
    out_f, out_b = pl.pallas_call(
        bilstm_layer_kernel,
        out_shape=(jax.ShapeDtypeStruct((TB, H), jnp.float32),
                   jax.ShapeDtypeStruct((TB, H), jnp.float32)),
        in_specs=[
            pl.BlockSpec((B, 1), lambda: (0, 0)),
            pl.BlockSpec((TB, Din), lambda: (0, 0)),
            pl.BlockSpec((Din, 8 * H), lambda: (0, 0)),
            pl.BlockSpec((2 * H, 8 * H), lambda: (0, 0)),
            pl.BlockSpec((1, 8 * H), lambda: (0, 0)),
        ],
        out_specs=(pl.BlockSpec((TB, H), lambda: (0, 0)),
                   pl.BlockSpec((TB, H), lambda: (0, 0))),
        scratch_shapes=[pltpu.VMEM((TB, 8 * H), jnp.float32)],
    )(lens, x_flat, wih, whh, b)
    return jnp.concatenate([out_f, out_b], axis=1)


# ======================= DocumentEncoder (forward) ==========================

def l2_normalize(w):
    # F.normalize(w): L2 normalize each row (dim=1)
    return w / jnp.maximum(jnp.linalg.norm(w, axis=1, keepdims=True), 1e-12)


def init_params(key):
    keys = jax.random.split(key, 40)
    ki = iter(keys)

    def u(shape, scale=0.1):
        return jax.random.uniform(next(ki), shape, jnp.float32, -scale, scale)

    params = {}
    # frozen, row-normalized word embedding tables (GloVe / Turian)
    params["glove_w"] = l2_normalize(jax.random.normal(next(ki), (GLOVE_VOCAB, GLOVE_DIM), jnp.float32))
    params["turian_w"] = l2_normalize(jax.random.normal(next(ki), (TURIAN_VOCAB, TURIAN_DIM), jnp.float32))
    # char embeddings, padding_idx=0 -> zero row
    char_w = u((CHAR_VOCAB + 2, CHAR_DIM))
    params["char_w"] = char_w.at[0].set(0.0)

    # CharCNN convs Conv1d(in=PAD_SIZE, out=CHAR_FILTERS, k), fused into a single
    # block-Toeplitz matrix: column block (global position p) of size F, rows
    # [(p+j)*C : (p+j+1)*C] hold W_k[:, :, j]^T.
    L, C, F_ = CHAR_DIM, PAD_SIZE, CHAR_FILTERS
    cols, bias_cols = [], []
    for k in KERNEL_SIZES:
        w = u((F_, C, k))                        # Conv1d weight (F, C_in, k)
        b = u((F_,))
        for p in range(L - k + 1):
            col = jnp.zeros((L * C, F_), jnp.float32)
            for j in range(k):
                col = col.at[(p + j) * C:(p + j + 1) * C, :].set(w[:, :, j].T)
            cols.append(col)
            bias_cols.append(b)
    params["charcnn_w"] = jnp.concatenate(cols, axis=1)          # (120, 90)
    params["charcnn_b"] = jnp.concatenate(bias_cols)[None, :]    # (1, 90)

    # bidirectional 2-layer LSTM -- store pre-fused per-layer weights:
    #   wih : (Din, 8H)  = [W_ih_fwd^T | W_ih_bwd^T]
    #   whh : (2H, 8H)   = block-diag(W_hh_fwd^T, W_hh_bwd^T)
    #   b   : (1, 8H)    = [b_ih_fwd + b_hh_fwd | b_ih_bwd + b_hh_bwd]
    H = HIDDEN_DIM
    lstm = []
    for layer in range(N_LAYERS):
        d_in = EMB_DIM if layer == 0 else 2 * H
        dir_p = []
        for _direction in (0, 1):
            dir_p.append((u((4 * H, d_in)),      # w_ih
                          u((4 * H, H)),         # w_hh
                          u((4 * H,)),           # b_ih
                          u((4 * H,))))          # b_hh
        (wif, whf, bif, bhf), (wib, whb, bib, bhb) = dir_p
        wih = jnp.concatenate([wif.T, wib.T], axis=1)            # (Din, 8H)
        whh = jnp.zeros((2 * H, 8 * H), jnp.float32)
        whh = whh.at[0:H, 0:4 * H].set(whf.T)
        whh = whh.at[H:2 * H, 4 * H:8 * H].set(whb.T)
        b = jnp.concatenate([bif + bhf, bib + bhb])[None, :]     # (1, 8H)
        lstm.append((wih, whh, b))
    params["lstm"] = lstm
    return params


def document_encoder_forward(doc, params):
    """doc = list of sentences (glove_ids (T,), turian_ids (T,), char_ids (T, PAD_SIZE)).
    Returns (cat(states), cat(embeds)) like the PyTorch module:
    states (sum_T, 2*HIDDEN_DIM), embeds (sum_T, EMB_DIM)."""
    sent_lens = [int(s[0].shape[0]) for s in doc]
    B = len(doc)
    T_max = max(sent_lens)

    # ---- batched embedding gathers over ALL document tokens (one XLA op each)
    glove_ids = jnp.concatenate([s[0] for s in doc])
    turian_ids = jnp.concatenate([s[1] for s in doc])
    char_ids = jnp.concatenate([s[2] for s in doc], axis=0)
    g = jnp.take(params["glove_w"], glove_ids, axis=0)            # (N, GLOVE_DIM)
    t = jnp.take(params["turian_w"], turian_ids, axis=0)          # (N, TURIAN_DIM)
    ce = jnp.take(params["char_w"], char_ids, axis=0)             # (N, PAD_SIZE, CHAR_DIM)

    # ---- fused CharCNN over all tokens at once
    ch = charcnn_pallas(ce, params["charcnn_w"], params["charcnn_b"])   # (N, F)
    embeds = jnp.concatenate([g, t, ch], axis=1)                  # (N, EMB_DIM)
    # emb_dropout / lstm_dropout: the reference forward discards their results,
    # so they are exact no-ops here.

    # ---- pad sentences to T_max, pack time-major-flat: row = t*B + b
    offsets = [0]
    for sl in sent_lens:
        offsets.append(offsets[-1] + sl)
    per_sent = []
    for b in range(B):
        e = embeds[offsets[b]:offsets[b + 1]]
        e = jnp.pad(e, ((0, T_max - sent_lens[b]), (0, 0)))
        per_sent.append(e)
    x = jnp.stack(per_sent, axis=1).reshape(T_max * B, EMB_DIM)
    lens = jnp.array(sent_lens, jnp.int32)[:, None]               # (B, 1)

    # ---- 2-layer bidirectional LSTM: one batched Pallas call per layer
    h = x
    for layer in range(N_LAYERS):
        wih, whh, b = params["lstm"][layer]
        h = bilstm_layer_pallas(h, lens, wih, whh, b)             # (T_max*B, 2H)

    # ---- unpack_and_unpad: restore per-sentence order and drop padding
    out = h.reshape(T_max, B, 2 * HIDDEN_DIM)
    states = jnp.concatenate([out[:sent_lens[b], b, :] for b in range(B)], axis=0)
    return states, embeds


# ================================= main =====================================

if __name__ == "__main__":
    key = jax.random.PRNGKey(0)
    pkey, dkey = jax.random.split(key)
    params = init_params(pkey)

    # Build a small synthetic "document": 2 sentences, lengths 5 and 7.
    sent_lens = (5, 7)
    doc = []
    for si, T in enumerate(sent_lens):
        k1, k2, k3, dkey = jax.random.split(dkey, 4)
        glove_ids = jax.random.randint(k1, (T,), 0, GLOVE_VOCAB, jnp.int32)
        turian_ids = jax.random.randint(k2, (T,), 0, TURIAN_VOCAB, jnp.int32)
        char_ids = jax.random.randint(k3, (T, PAD_SIZE), 1, CHAR_VOCAB + 2, jnp.int32)
        # simulate char padding: tokens have 6 "real" chars, rest is <PAD>=0
        char_ids = char_ids.at[:, 6:].set(0)
        doc.append((glove_ids, turian_ids, char_ids))

    states, embeds = document_encoder_forward(doc, params)
    states = jax.block_until_ready(states)
    embeds = jax.block_until_ready(embeds)

    total_tokens = sum(sent_lens)
    assert states.shape == (total_tokens, 2 * HIDDEN_DIM)
    assert embeds.shape == (total_tokens, EMB_DIM)
    assert bool(jnp.all(jnp.isfinite(states))) and bool(jnp.all(jnp.isfinite(embeds)))

    # TODO(synk): string->char-id lookup (CharCNN.stoi) is host-side text
    # processing; synthetic integer ids are used instead.
    print("KERNEL_OK")
</pallas_src>

<mosaic_0001>
module attributes {stable_mosaic.version = 11 : i64} {
  func.func @charcnn_kernel(%arg0: memref<12x120xf32, #tpu.memory_space<vmem>>, %arg1: memref<120x90xf32, #tpu.memory_space<vmem>>, %arg2: memref<1x90xf32, #tpu.memory_space<vmem>>, %arg3: memref<12x6xf32, #tpu.memory_space<vmem>>) attributes {dimension_semantics = [], scalar_prefetch = 0 : i64, scratch_operands = 0 : i64, tpu.core_type = #tpu.core_type<tc>} {
    %c0 = arith.constant 0 : index
    %c0_0 = arith.constant 0 : index
    %0 = vector.load %arg0[%c0, %c0_0] : memref<12x120xf32, #tpu.memory_space<vmem>>, vector<12x120xf32>
    %c0_1 = arith.constant 0 : index
    %c0_2 = arith.constant 0 : index
    %1 = vector.load %arg1[%c0_1, %c0_2] : memref<120x90xf32, #tpu.memory_space<vmem>>, vector<120x90xf32>
    %cst = arith.constant dense<0.000000e+00> : vector<12x90xf32>
    %2 = tpu.matmul %0, %1, %cst {dimension_numbers = #tpu.dot_dimension_numbers<[1], [0], [0], [1], [0, 0, 1, 1], [], []>} : vector<12x120xf32>, vector<120x90xf32>, vector<12x90xf32> -> vector<12x90xf32>
    %c0_3 = arith.constant 0 : index
    %c0_4 = arith.constant 0 : index
    %3 = vector.load %arg2[%c0_3, %c0_4] : memref<1x90xf32, #tpu.memory_space<vmem>>, vector<1x90xf32>
    %4 = vector.broadcast %3 : vector<1x90xf32> to vector<12x90xf32>
    %5 = arith.addf %2, %4 : vector<12x90xf32>
    %cst_5 = arith.constant 0.000000e+00 : f32
    %6 = vector.broadcast %cst_5 : f32 to vector<12x90xf32>
    %7 = arith.maximumf %5, %6 : vector<12x90xf32>
    %8 = vector.extract_strided_slice %7 {offsets = [0, 0], sizes = [12, 6], strides = [1, 1]} : vector<12x90xf32> to vector<12x6xf32>
    %9 = vector.extract_strided_slice %7 {offsets = [0, 6], sizes = [12, 6], strides = [1, 1]} : vector<12x90xf32> to vector<12x6xf32>
    %10 = arith.maximumf %8, %9 : vector<12x6xf32>
    %11 = vector.extract_strided_slice %7 {offsets = [0, 12], sizes = [12, 6], strides = [1, 1]} : vector<12x90xf32> to vector<12x6xf32>
    %12 = arith.maximumf %10, %11 : vector<12x6xf32>
    %13 = vector.extract_strided_slice %7 {offsets = [0, 18], sizes = [12, 6], strides = [1, 1]} : vector<12x90xf32> to vector<12x6xf32>
    %14 = arith.maximumf %12, %13 : vector<12x6xf32>
    %15 = vector.extract_strided_slice %7 {offsets = [0, 24], sizes = [12, 6], strides = [1, 1]} : vector<12x90xf32> to vector<12x6xf32>
    %16 = arith.maximumf %14, %15 : vector<12x6xf32>
    %17 = vector.extract_strided_slice %7 {offsets = [0, 30], sizes = [12, 6], strides = [1, 1]} : vector<12x90xf32> to vector<12x6xf32>
    %18 = arith.maximumf %16, %17 : vector<12x6xf32>
    %19 = vector.extract_strided_slice %7 {offsets = [0, 36], sizes = [12, 6], strides = [1, 1]} : vector<12x90xf32> to vector<12x6xf32>
    %20 = arith.maximumf %18, %19 : vector<12x6xf32>
    %21 = vector.extract_strided_slice %7 {offsets = [0, 42], sizes = [12, 6], strides = [1, 1]} : vector<12x90xf32> to vector<12x6xf32>
    %22 = arith.maximumf %20, %21 : vector<12x6xf32>
    %23 = vector.extract_strided_slice %7 {offsets = [0, 48], sizes = [12, 6], strides = [1, 1]} : vector<12x90xf32> to vector<12x6xf32>
    %24 = arith.maximumf %22, %23 : vector<12x6xf32>
    %25 = vector.extract_strided_slice %7 {offsets = [0, 54], sizes = [12, 6], strides = [1, 1]} : vector<12x90xf32> to vector<12x6xf32>
    %26 = arith.maximumf %24, %25 : vector<12x6xf32>
    %27 = vector.extract_strided_slice %7 {offsets = [0, 60], sizes = [12, 6], strides = [1, 1]} : vector<12x90xf32> to vector<12x6xf32>
    %28 = arith.maximumf %26, %27 : vector<12x6xf32>
    %29 = vector.extract_strided_slice %7 {offsets = [0, 66], sizes = [12, 6], strides = [1, 1]} : vector<12x90xf32> to vector<12x6xf32>
    %30 = arith.maximumf %28, %29 : vector<12x6xf32>
    %31 = vector.extract_strided_slice %7 {offsets = [0, 72], sizes = [12, 6], strides = [1, 1]} : vector<12x90xf32> to vector<12x6xf32>
    %32 = arith.maximumf %30, %31 : vector<12x6xf32>
    %33 = vector.extract_strided_slice %7 {offsets = [0, 78], sizes = [12, 6], strides = [1, 1]} : vector<12x90xf32> to vector<12x6xf32>
    %34 = arith.maximumf %32, %33 : vector<12x6xf32>
    %35 = vector.extract_strided_slice %7 {offsets = [0, 84], sizes = [12, 6], strides = [1, 1]} : vector<12x90xf32> to vector<12x6xf32>
    %36 = arith.maximumf %34, %35 : vector<12x6xf32>
    %c0_6 = arith.constant 0 : index
    %c0_7 = arith.constant 0 : index
    %37 = vector.load %arg3[%c0_6, %c0_7] : memref<12x6xf32, #tpu.memory_space<vmem>>, vector<12x6xf32>
    tpu.vector_store %arg3[%c0_6, %c0_7], %36 {strides = array<i32>} : memref<12x6xf32, #tpu.memory_space<vmem>>, vector<12x6xf32>,
    return
  }
}

</mosaic_0001>

<bundles_post_ra>
// kernel: tpu_custom_call.1
= control target key start
LH: loop header
LB: loop body
LE: loop exit
PB: predicated region body
PF: predicated region fallthrough
CT: control target
= control target key end

     0   :  { %vm38_vm0 = vcmask 982016   ;;  %s312_s21 = smov 122   ;;  %s313_s22 = smov 110   ;;  %vm238_vm1 = vcmask 44032   ;;  %vm236_vm2 = vcmask 48128   ;;  %s407_s1 = inlined_call_operand.vmem [shape: f32[120,90], index: 1, kind: input, shape index: {}]   ;;  %s408_s0 = inlined_call_operand.vmem [shape: f32[12,120], index: 0, kind: input, shape index: {}]   ;;  %s409_s2 = inlined_call_operand.vmem [shape: f32[1,90], index: 2, kind: input, shape index: {}]   ;;  %s410_s3 = inlined_call_operand.vmem [shape: f32[12,6], index: 3, kind: output, shape index: {}]  }
   0x1   :  { %v30_v0 = vld [vmem:[%s407_s1 + $0x70] sm:$0xff]  ;;  %v29_v1 = vld [vmem:[%s407_s1 + $0x68] sm:$0xff]  ;;  %v28_v2 = vld [vmem:[%s407_s1 + $0x60] sm:$0xff]  ;;  %s315_s23 = smov 98   ;;  %s317_s24 = smov 86  }
   0x2   :  { %264 = vmatprep.subr.mxu0 %v30_v0  ;;  %v27_v3 = vld [vmem:[%s407_s1 + $0x58] sm:$0xff]  ;;  %v14_v4 = vld [vmem:[%s408_s0] sm:$0xff]  ;;  %v26_v5 = vld [vmem:[%s407_s1 + $0x50] sm:$0xff]  ;;  %s318_s25 = smov 80   ;;  %s319_s26 = smov 74  }
   0x3   :  { %265 = vmatpush3.msra.mxu0 %v30_v0  ;;  %294 = vmatprep.mubr.msk.f32.mxu0 %vm38_vm0, %v14_v4  ;;  %v25_v6 = vld [vmem:[%s407_s1 + $0x48] sm:$0xff]  ;;  %v24_v7 = vld [vmem:[%s407_s1 + $0x40] sm:$0xff]  ;;  %v23_v8 = vld [vmem:[%s407_s1 + $0x38] sm:$0xff]  ;;  %s320_s27 = smov 68   ;;  %s321_s28 = smov 62  }
   0x4   :  { %266 = vmatprep.subr.mxu0 %v29_v1  ;;  %v22_v9 = vld [vmem:[%s407_s1 + $0x30] sm:$0xff]  ;;  %v21_v10 = vld [vmem:[%s407_s1 + $0x28] sm:$0xff]  ;;  %v20_v11 = vld [vmem:[%s407_s1 + $0x20] sm:$0xff]  ;;  %s322_s29 = smov 56   ;;  %s323_s30 = smov 50  }
   0x5   :  { %267 = vmatpush3.msra.mxu0 %v29_v1  ;;  %v19_v12 = vld [vmem:[%s407_s1 + $0x18] sm:$0xff]  ;;  %v18_v13 = vld [vmem:[%s407_s1 + $0x10] sm:$0xff]  ;;  %v17_v14 = vld [vmem:[%s407_s1 + $0x8] sm:$0xff]  ;;  %s324_s4 = smov 44  }
   0x6   :  { %268 = vmatprep.subr.mxu0 %v28_v2  ;;  %v16_v15 = vld [vmem:[%s407_s1] sm:$0xff]  ;;  %v15_v16 = vld [vmem:[%s408_s0 + $0x8] sm:$0xf]  ;;  %s311_s1 = smov 116   ;;  %s314_s0 = smov 104  }
   0x7   :  { %269 = vmatpush3.msra.mxu0 %v28_v2  ;;  %v244_v17 = vld [vmem:[%s409_s2] ss:$0 sm:$0xff]  ;;  %s316_s2 = smov 92  }
   0x8   :  { %270 = vmatprep.subr.mxu0 %v27_v3 }
   0x9   :  { %271 = vmatpush3.msra.mxu0 %v27_v3 }
   0xa   :  { %272 = vmatprep.subr.mxu0 %v26_v5 }
   0xb   :  { %273 = vmatpush3.msra.mxu0 %v26_v5 }
   0xc   :  { %274 = vmatprep.subr.mxu0 %v25_v6 }
   0xd   :  { %275 = vmatpush3.msra.mxu0 %v25_v6 }
   0xe   :  { %276 = vmatprep.subr.mxu0 %v24_v7 }
   0xf   :  { %277 = vmatpush3.msra.mxu0 %v24_v7 }
  0x10   :  { %278 = vmatprep.subr.mxu0 %v23_v8 }
  0x11   :  { %279 = vmatpush3.msra.mxu0 %v23_v8 }
  0x12   :  { %280 = vmatprep.subr.mxu0 %v22_v9 }
  0x13   :  { %281 = vmatpush3.msra.mxu0 %v22_v9 }
  0x14   :  { %282 = vmatprep.subr.mxu0 %v21_v10 }
  0x15   :  { %283 = vmatpush3.msra.mxu0 %v21_v10 }
  0x16   :  { %284 = vmatprep.subr.mxu0 %v20_v11 }
  0x17   :  { %285 = vmatpush3.msra.mxu0 %v20_v11 }
  0x18   :  { %286 = vmatprep.subr.mxu0 %v19_v12 }
  0x19   :  { %287 = vmatpush3.msra.mxu0 %v19_v12 }
  0x1a   :  { %288 = vmatprep.subr.mxu0 %v18_v13 }
  0x1b   :  { %289 = vmatpush3.msra.mxu0 %v18_v13 }
  0x1c   :  { %290 = vmatprep.subr.mxu0 %v17_v14 }
  0x1d   :  { %291 = vmatpush3.msra.mxu0 %v17_v14 }
  0x1e   :  { %292 = vmatprep.subr.mxu0 %v16_v15 }
  0x1f   :  { %293 = vmatpush3.msra.mxu0 %v16_v15 }
  0x20   :  { %295 = vmatmul.mubr.msk.f32.vlgmr.msra.gmra.mxu0 %vm38_vm0, %v15_v16 }
  0xe0   :  { %v296_v18 = vpop.f32.mrf.mxu0 }
  0xe1   :  { %v117_v19 = vadd.f32 %v296_v18, %v244_v17 }
  0xe2   :  { %v111_v20 = vpop.f32.mrf.mxu0 }
  0xe3   :  { %v121_v21 = vmax.f32 %v117_v19, 0.0  ;;  %v112_v22 = vadd.f32 %v244_v17, %v111_v20 }
  0xe5   :  { %134 = vrot.lane.b32.xlu1 %v121_v21, %s311_s1  ;;  %126 = vrot.lane.b32.xlu0 %v121_v21, %s312_s21  ;;  %v120_v23 = vmax.f32 %v112_v22, 0.0 }
  0xe9   :  { %142 = vrot.lane.b32.xlu1 %v121_v21, %s313_s22  ;;  %124 = vrot.lane.b32.xlu0 %v120_v23, %s312_s21 }
  0xed   :  { %150 = vrot.lane.b32.xlu1 %v121_v21, %s314_s0  ;;  %140 = vrot.lane.b32.xlu0 %v120_v23, %s313_s22 }
  0xf1   :  { %158 = vrot.lane.b32.xlu1 %v121_v21, %s315_s23  ;;  %148 = vrot.lane.b32.xlu0 %v120_v23, %s314_s0 }
  0xf5   :  { %166 = vrot.lane.b32.xlu1 %v121_v21, %s316_s2  ;;  %156 = vrot.lane.b32.xlu0 %v120_v23, %s315_s23 }
  0xf9   :  { %174 = vrot.lane.b32.xlu1 %v121_v21, %s317_s24  ;;  %164 = vrot.lane.b32.xlu0 %v120_v23, %s316_s2 }
  0xfd   :  { %182 = vrot.lane.b32.xlu1 %v121_v21, %s318_s25  ;;  %172 = vrot.lane.b32.xlu0 %v120_v23, %s317_s24 }
 0x101   :  { %132 = vrot.lane.b32.xlu1 %v120_v23, %s311_s1  ;;  %180 = vrot.lane.b32.xlu0 %v120_v23, %s318_s25 }
 0x105   :  { %190 = vrot.lane.b32.xlu1 %v121_v21, %s319_s26  ;;  %188 = vrot.lane.b32.xlu0 %v120_v23, %s319_s26 }
 0x109   :  { %198 = vrot.lane.b32.xlu1 %v121_v21, %s320_s27  ;;  %196 = vrot.lane.b32.xlu0 %v120_v23, %s320_s27 }
 0x10d   :  { %206 = vrot.lane.b32.xlu1 %v121_v21, %s321_s28  ;;  %204 = vrot.lane.b32.xlu0 %v120_v23, %s321_s28 }
 0x111   :  { %214 = vrot.lane.b32.xlu1 %v121_v21, %s322_s29  ;;  %212 = vrot.lane.b32.xlu0 %v120_v23, %s322_s29 }
 0x115   :  { %222 = vrot.lane.b32.xlu1 %v121_v21, %s323_s30  ;;  %220 = vrot.lane.b32.xlu0 %v120_v23, %s323_s30 }
 0x119   :  { %230 = vrot.lane.b32.xlu1 %v121_v21, %s324_s4  ;;  %228 = vrot.lane.b32.xlu0 %v120_v23, %s324_s4 }
 0x157   :  { %v135_v24 = vpop.permute.xlu1 %134  ;;  %v127_v25 = vpop.permute.xlu0 %126 }
 0x158   :  { %v131_v36 = vmax.f32 %v121_v21, %v127_v25 }
 0x15a   :  { %v139_v39 = vmax.f32 %v131_v36, %v135_v24 }
 0x15b   :  { %v143_v26 = vpop.permute.xlu1 %142  ;;  %v125_v27 = vpop.permute.xlu0 %124 }
 0x15c   :  { %v130_v40 = vmax.f32 %v120_v23, %v125_v27  ;;  %v147_v44 = vmax.f32 %v139_v39, %v143_v26 }
 0x15f   :  { %v151_v28 = vpop.permute.xlu1 %150  ;;  %v141_v29 = vpop.permute.xlu0 %140 }
 0x160   :  { %v155_v48 = vmax.f32 %v147_v44, %v151_v28 }
 0x163   :  { %v159_v30 = vpop.permute.xlu1 %158  ;;  %v149_v31 = vpop.permute.xlu0 %148 }
 0x164   :  { %v163_v50 = vmax.f32 %v155_v48, %v159_v30 }
 0x167   :  { %v167_v32 = vpop.permute.xlu1 %166  ;;  %v157_v33 = vpop.permute.xlu0 %156 }
 0x168   :  { %v171_v54 = vmax.f32 %v163_v50, %v167_v32 }
 0x16b   :  { %v175_v34 = vpop.permute.xlu1 %174  ;;  %v165_v35 = vpop.permute.xlu0 %164 }
 0x16c   :  { %v179_v56 = vmax.f32 %v171_v54, %v175_v34 }
 0x16f   :  { %v183_v37 = vpop.permute.xlu1 %182  ;;  %v173_v38 = vpop.permute.xlu0 %172 }
 0x170   :  { %v187_v60 = vmax.f32 %v179_v56, %v183_v37 }
 0x173   :  { %v133_v41 = vpop.permute.xlu1 %132  ;;  %v181_v42 = vpop.permute.xlu0 %180 }
 0x174   :  { %v138_v43 = vmax.f32 %v130_v40, %v133_v41 }
 0x176   :  { %v146_v45 = vmax.f32 %v138_v43, %v141_v29 }
 0x177   :  { %v191_v46 = vpop.permute.xlu1 %190  ;;  %v189_v47 = vpop.permute.xlu0 %188 }
 0x178   :  { %v154_v49 = vmax.f32 %v146_v45, %v149_v31  ;;  %v195_v62 = vmax.f32 %v187_v60, %v191_v46 }
 0x17a   :  { %v162_v51 = vmax.f32 %v154_v49, %v157_v33 }
 0x17b   :  { %v199_v52 = vpop.permute.xlu1 %198  ;;  %v197_v53 = vpop.permute.xlu0 %196 }
 0x17c   :  { %v170_v55 = vmax.f32 %v162_v51, %v165_v35  ;;  %v203_v2 = vmax.f32 %v195_v62, %v199_v52 }
 0x17e   :  { %v178_v57 = vmax.f32 %v170_v55, %v173_v38 }
 0x17f   :  { %v207_v58 = vpop.permute.xlu1 %206  ;;  %v205_v59 = vpop.permute.xlu0 %204 }
 0x180   :  { %v186_v61 = vmax.f32 %v178_v57, %v181_v42  ;;  %v211_v4 = vmax.f32 %v203_v2, %v207_v58 }
 0x182   :  { %v194_v63 = vmax.f32 %v186_v61, %v189_v47 }
 0x183   :  { %v215_v0 = vpop.permute.xlu1 %214  ;;  %v213_v1 = vpop.permute.xlu0 %212 }
 0x184   :  { %v202_v3 = vmax.f32 %v194_v63, %v197_v53  ;;  %v219_v8 = vmax.f32 %v211_v4, %v215_v0 }
 0x186   :  { %v210_v5 = vmax.f32 %v202_v3, %v205_v59 }
 0x187   :  { %v223_v6 = vpop.permute.xlu1 %222  ;;  %v221_v7 = vpop.permute.xlu0 %220 }
 0x188   :  { %v218_v9 = vmax.f32 %v210_v5, %v213_v1  ;;  %v227_v10 = vmax.f32 %v219_v8, %v223_v6 }
 0x18a   :  { %v226_v11 = vmax.f32 %v218_v9, %v221_v7 }
 0x18b   :  { %v231_v12 = vpop.permute.xlu1 %230  ;;  %v229_v13 = vpop.permute.xlu0 %228 }
 0x18c   :  { %v235_v14 = vmax.f32 %v227_v10, %v231_v12  ;;  %v234_v15 = vmax.f32 %v226_v11, %v229_v13 }
 0x18e   :  { %239 = vst.msk [vmem:[%s410_s3 + $0x8] sm:$0xf] %vm238_vm1, %v235_v14 }
 0x18f   :  { %237 = vst.msk [vmem:[%s410_s3] sm:$0xff] %vm236_vm2, %v234_v15 }

</bundles_post_ra>
